<compile_context>
chip_gen: v5e
topology: v5e:2x2
jax: 0.10.0
libtpu: 0.0.40
codegen_flags: <defaults>
</compile_context>

<pallas_src>
import math
import functools

import jax
import jax.numpy as jnp
from jax.experimental import pallas as pl
from jax.experimental.pallas import tpu as pltpu


def make_pe_table(max_len: int, d_model: int) -> jnp.ndarray:
    """Sinusoidal positional-encoding table, identical to the PyTorch __init__."""
    position = jnp.arange(max_len, dtype=jnp.float32)[:, None]            # (max_len, 1)
    div_term = jnp.exp(
        jnp.arange(0, d_model, 2, dtype=jnp.float32) * (-math.log(10000.0) / d_model)
    )                                                                      # (d_model/2,)
    pe = jnp.zeros((max_len, d_model), dtype=jnp.float32)
    pe = pe.at[:, 0::2].set(jnp.sin(position * div_term))
    pe = pe.at[:, 1::2].set(jnp.cos(position * div_term))
    return pe                                                              # (max_len, d_model)


def _hash_u32(v):
    """Murmur3-finalizer-style mixer on uint32 vectors (pure VPU ops)."""
    v = v ^ (v >> 16)
    v = v * jnp.uint32(0x7FEB352D)
    v = v ^ (v >> 15)
    v = v * jnp.uint32(0x846CA68B)
    v = v ^ (v >> 16)
    return v


def _pe_kernel(seed_ref, x_ref, pe_ref, o_ref, *, scale, p_drop, train):
    # x_ref / pe_ref / o_ref: (tile_s, B*D) -- lane-dense, purely elementwise.
    y = x_ref[...].astype(jnp.float32) * scale + pe_ref[...]

    if train and p_drop > 0.0:
        rows, cols = y.shape
        # Stateless counter-based PRNG: hash(global element index, seed).
        r = jax.lax.broadcasted_iota(jnp.int32, (rows, cols), 0).astype(jnp.uint32)
        c = jax.lax.broadcasted_iota(jnp.int32, (rows, cols), 1).astype(jnp.uint32)
        base = (pl.program_id(0) * rows).astype(jnp.uint32)
        idx = (base + r) * jnp.uint32(cols) + c
        seed = seed_ref[0].astype(jnp.uint32)
        bits = _hash_u32(idx ^ (seed * jnp.uint32(0x9E3779B9) + jnp.uint32(0x85EBCA6B)))

        threshold = jnp.uint32(min(int(round(p_drop * 4294967296.0)), 0xFFFFFFFF))
        keep = bits >= threshold                       # P(keep) = 1 - p_drop
        y = jnp.where(keep, y * (1.0 / (1.0 - p_drop)), 0.0)

    o_ref[...] = y.astype(o_ref.dtype)


def _round_up(n: int, m: int) -> int:
    return ((n + m - 1) // m) * m


def positional_encoding_forward(x, pe_table, *, d_model, p_drop=0.1, seed=0,
                                train=True, target_block_bytes=2 << 20):
    """x: (S, B, D). Returns dropout(x * sqrt(d_model) + pe[:S]) with x's dtype."""
    S, B, D = x.shape
    assert D == d_model
    assert 0.0 <= p_drop < 1.0, "p_drop must be in [0, 1)"

    BD = B * D
    # Lane-dense layout: merge (B, D) into the last dim (free, contiguous reshape).
    # pe is tiled across the batch in the wrapper so the kernel needs no
    # in-kernel broadcast/reshape (B*D is small for this module).
    x2 = x.reshape(S, BD)
    pe2 = jnp.tile(pe_table[:S].astype(jnp.float32), (1, B))              # (S, B*D)

    # Tile sizing: ~target_block_bytes per block; sublane dim multiple of 8.
    row_bytes = BD * 4
    rows = max(8, (target_block_bytes // row_bytes) // 8 * 8)
    tile_s = min(rows, _round_up(S, 8))
    S_pad = _round_up(S, tile_s)
    if S_pad != S:
        x2 = jnp.pad(x2, ((0, S_pad - S), (0, 0)))
        pe2 = jnp.pad(pe2, ((0, S_pad - S), (0, 0)))

    seed_arr = jnp.array([seed], dtype=jnp.int32)
    kernel = functools.partial(_pe_kernel, scale=math.sqrt(d_model),
                               p_drop=float(p_drop), train=bool(train))

    out2 = pl.pallas_call(
        kernel,
        out_shape=jax.ShapeDtypeStruct((S_pad, BD), x.dtype),
        grid_spec=pltpu.PrefetchScalarGridSpec(
            num_scalar_prefetch=1,                     # seed lands in SMEM
            grid=(S_pad // tile_s,),
            in_specs=[
                pl.BlockSpec((tile_s, BD), lambda i, _seed: (i, 0)),      # x
                pl.BlockSpec((tile_s, BD), lambda i, _seed: (i, 0)),      # pe (tiled)
            ],
            out_specs=pl.BlockSpec((tile_s, BD), lambda i, _seed: (i, 0)),
        ),
        compiler_params=pltpu.CompilerParams(
            dimension_semantics=("parallel",),         # independent steps -> 2 TCs on v7x
            vmem_limit_bytes=32 << 20,
        ),
    )(seed_arr, x2, pe2)

    return out2[:S].reshape(S, B, D)


if __name__ == "__main__":
    # Small shapes consistent with the module: seq=8, batch=2, d_model=32.
    S, B, D = 8, 2, 32
    MAX_LEN = 5000
    P_DROP = 0.1

    key = jax.random.PRNGKey(0)
    x = jax.random.normal(key, (S, B, D), dtype=jnp.float32)
    pe_table = make_pe_table(MAX_LEN, D)

    ref = x * math.sqrt(D) + pe_table[:S][:, None, :]

    # Eval mode (dropout = identity): must match the pure-JAX reference.
    out_eval = jax.block_until_ready(
        positional_encoding_forward(x, pe_table, d_model=D, p_drop=P_DROP, train=False))
    assert out_eval.shape == (S, B, D)
    assert jnp.allclose(out_eval, ref, atol=1e-5, rtol=1e-5), "eval mismatch"

    # Train mode: inverted dropout -> each element is 0 or ref / (1 - p).
    out_train = jax.block_until_ready(
        positional_encoding_forward(x, pe_table, d_model=D, p_drop=P_DROP,
                                    seed=1234, train=True))
    assert out_train.shape == (S, B, D)
    scaled = ref / (1.0 - P_DROP)
    ok = jnp.isclose(out_train, scaled, atol=1e-5, rtol=1e-5) | (out_train == 0.0)
    assert bool(jnp.all(ok)), "train-mode dropout values inconsistent"

    print("KERNEL_OK")
</pallas_src>

<mosaic_0001>
module attributes {stable_mosaic.version = 11 : i64} {
  func.func @_pe_kernel(%arg0: i32, %arg1: memref<1xi32, #tpu.memory_space<smem>>, %arg2: memref<8x64xf32, #tpu.memory_space<vmem>>, %arg3: memref<8x64xf32, #tpu.memory_space<vmem>>, %arg4: memref<8x64xf32, #tpu.memory_space<vmem>>) attributes {dimension_semantics = [#tpu.dimension_semantics<parallel>], iteration_bounds = array<i64: 1>, scalar_prefetch = 1 : i64, scratch_operands = 0 : i64, tpu.core_type = #tpu.core_type<tc>, window_params = [{transform_indices = @transform_0, window_bounds = array<i64: 8, 64>}, {transform_indices = @transform_1, window_bounds = array<i64: 8, 64>}, {transform_indices = @transform_2, window_bounds = array<i64: 8, 64>}]} {
    %c0 = arith.constant 0 : index
    %c0_0 = arith.constant 0 : index
    %0 = vector.load %arg2[%c0, %c0_0] : memref<8x64xf32, #tpu.memory_space<vmem>>, vector<8x64xf32>
    %cst = arith.constant 5.65685415 : f32
    %1 = vector.broadcast %cst : f32 to vector<8x64xf32>
    %2 = arith.mulf %0, %1 : vector<8x64xf32>
    %c0_1 = arith.constant 0 : index
    %c0_2 = arith.constant 0 : index
    %3 = vector.load %arg3[%c0_1, %c0_2] : memref<8x64xf32, #tpu.memory_space<vmem>>, vector<8x64xf32>
    %4 = arith.addf %2, %3 : vector<8x64xf32>
    %c0_3 = arith.constant 0 : index
    %c0_4 = arith.constant 0 : index
    %5 = vector.load %arg4[%c0_3, %c0_4] : memref<8x64xf32, #tpu.memory_space<vmem>>, vector<8x64xf32>
    tpu.vector_store %arg4[%c0_3, %c0_4], %4 {strides = array<i32>} : memref<8x64xf32, #tpu.memory_space<vmem>>, vector<8x64xf32>,
    return
  }
  func.func @transform_0(%arg0: i32, %arg1: memref<1xi32, #tpu.memory_space<smem>>) -> (i32, i32) {
    %c0_i32 = arith.constant 0 : i32
    %c0_i32_0 = arith.constant 0 : i32
    return %arg0, %c0_i32 : i32, i32
  }
  func.func @transform_1(%arg0: i32, %arg1: memref<1xi32, #tpu.memory_space<smem>>) -> (i32, i32) {
    %c0_i32 = arith.constant 0 : i32
    %c0_i32_0 = arith.constant 0 : i32
    return %arg0, %c0_i32 : i32, i32
  }
  func.func @transform_2(%arg0: i32, %arg1: memref<1xi32, #tpu.memory_space<smem>>) -> (i32, i32) {
    %c0_i32 = arith.constant 0 : i32
    %c0_i32_0 = arith.constant 0 : i32
    return %arg0, %c0_i32 : i32, i32
  }
}

</mosaic_0001>

<bundles_post_ra>
// kernel: tpu_custom_call.1
= control target key start
LH: loop header
LB: loop body
LE: loop exit
PB: predicated region body
PF: predicated region fallthrough
CT: control target
= control target key end

     0   :  { %9 = vsyncpa [#allocation5], 0  ;;  %s179_s0 = inlined_call_operand.<no memory space> [shape: s32[1], index: 0, kind: input, shape index: {}]   ;;  %s180_s1 = inlined_call_operand.hbm [shape: f32[8,64], index: 1, kind: input, shape index: {}]   ;;  %s181_s2 = inlined_call_operand.hbm [shape: f32[8,64], index: 2, kind: input, shape index: {}]   ;;  %s182_s3 = inlined_call_operand.hbm [shape: f32[8,64], index: 3, kind: output, shape index: {}]  }
   0x1   :  { %10 = vsyncpa [#allocation8], 0 }
   0x2   :  { %11 = vsyncpa [#allocation6], 0  ;;  %s17_s14 = sshll.u32 %s180_s1, 4  ;;  %s147_s15 = smov [#allocation4]   ;;  %s18_s14 = int_to_ptr.hbm [resolvable:$true] %s17_s14 }
   0x3   :  { %s19_s16 = sshll.u32 %s147_s15, 4  ;;  %s28_s18 = sshll.u32 %s181_s2, 4  ;;  %s20_s16 = int_to_ptr.vmem [resolvable:$true] %s19_s16  ;;  %s29_s18 = int_to_ptr.hbm [resolvable:$true] %s28_s18 }
   0x4   :  { %22 = dma.hbm_to_vmem [thread:$0]  %s18_s14, 128, %s20_s16, [#allocation5]  }
   0x5   :  { %s148_s19 = smov [#allocation7]  }
   0x6   :  { %s30_s20 = sshll.u32 %s148_s19, 4  ;;  %s31_s20 = int_to_ptr.vmem [resolvable:$true] %s30_s20 }
   0x7   :  { %33 = dma.hbm_to_vmem [thread:$0]  %s29_s18, 128, %s31_s20, [#allocation8]  }
   0x8   :  { %141 = dma.done.wait [#allocation5], 128  }
   0x9   :  { %142 = vsyncadd [#allocation5], 4294967168 }
   0xa   :  { %143 = dma.done.wait [#allocation8], 128  }
   0xb   :  { %144 = vsyncadd [#allocation8], 4294967168  ;;  %v42_v0 = vld [vmem:[#allocation4] sm:$0xff]  ;;  %v44_v1 = vld [vmem:[#allocation7] sm:$0xff]  ;;  %s149_s1 = smov [#allocation9]   ;;  %s55_s24 = sshll.u32 %s182_s3, 4  ;;  %s56_s24 = int_to_ptr.hbm [resolvable:$true] %s55_s24 }
   0xc   :  { %s53_s21 = sshll.u32 %s149_s1, 4  ;;  %v43_v2 = vmul.f32 5.656854, %v42_v0  ;;  %vm46_vm0 = vcmask 523264   ;;  %s54_s21 = int_to_ptr.vmem [resolvable:$true] %s53_s21 }
   0xe   :  { %v45_v3 = vadd.f32 %v44_v1, %v43_v2 }
  0x10   :  { %47 = vst.msk [vmem:[#allocation9] sm:$0xff] %vm46_vm0, %v45_v3 }
  0x11   :  { %58 = dma.vmem_to_hbm [thread:$0]  %s54_s21, 128, %s56_s24, [#allocation6]  }
  0x12   :  { %145 = dma.done.wait [#allocation6], 128  }
  0x13   :  { %146 = vsyncadd [#allocation6], 4294967168 }
  0x14   :  { %63 = vsyncpa [#allocation5], 1 }
  0x15   :  { %64 = vsyncpa [#allocation8], 1 }
  0x16   :  { %65 = vsyncpa [#allocation6], 1 }

</bundles_post_ra>
